<compile_context>
chip_gen: v5e
topology: v5e:2x2
jax: 0.10.0
libtpu: 0.0.40
codegen_flags: <defaults>
</compile_context>

<pallas_src>
import functools

import jax
import jax.numpy as jnp
from jax.experimental import pallas as pl
from jax.experimental.pallas import tpu as pltpu  # noqa: F401  (memory-space / future RDMA use)

LANE = 128
SUBLANE = 8


# ----------------------------- Pallas kernel -------------------------------

def _fused_forward_kernel(x_ref, w1_ref, w2_ref, b2_ref, w3_ref, flat_ref,
                          out_ref, peer_ref, *, out_dim, world_size):
    # ---- module forward: fc1 -> ReLU -> fc2(+bias) -> ReLU -> fc3 -> softmax
    x = x_ref[...]
    h1 = jnp.maximum(
        jnp.dot(x, w1_ref[...], preferred_element_type=jnp.float32), 0.0)
    h2 = jnp.dot(h1, w2_ref[...], preferred_element_type=jnp.float32) + b2_ref[...]
    h2 = jnp.maximum(h2, 0.0)
    logits = jnp.dot(h2, w3_ref[...], preferred_element_type=jnp.float32)

    # Softmax must only see the original `out_dim` logits; the zero-padded
    # columns are masked to a huge negative so their exp underflows to 0.
    col = jax.lax.broadcasted_iota(jnp.int32, logits.shape, 1)
    logits = jnp.where(col < out_dim, logits, -1e30)
    m = jnp.max(logits, axis=-1, keepdims=True)
    e = jnp.exp(logits - m)
    denom = jnp.sum(e, axis=-1, keepdims=True)
    # Exact divide: the approx EUP reciprocal was ~1e-3 off, which broke the
    # row-sum==1 invariant of softmax.  This workload is launch-bound, so the
    # VPU divide is free in practice.
    out_ref[...] = (e / denom).astype(out_ref.dtype)

    # ---- peer-weight averaging (peer_selection_mode == 'all')
    # Every rank holds identical params after the rank-0 broadcast, so the
    # all-reduce sum over world_size replicas equals flat * world_size; the
    # subsequent division by world_size recovers the mean without ever
    # materializing a [world_size, N] replica buffer in HBM.
    # TODO(synk): a real multi-chip all-reduce would be a ring of
    # pltpu.make_async_remote_copy + semaphores interleaved with the matmuls.
    w = flat_ref[...]
    acc = w * jnp.float32(world_size)          # simulated all-reduce sum
    peer_ref[...] = acc * jnp.float32(1.0 / world_size)


# ------------------------------ JAX wrappers --------------------------------

def _pad2d(a, rows, cols):
    r, c = a.shape
    return jnp.pad(a, ((0, rows - r), (0, cols - c)))


def build_and_flatten_params_reversed(w1, w2, b2, w3):
    # PyTorch parameter order of the module: fc1.weight, fc2.weight, fc2.bias,
    # fc3.weight. `_build_params` reverses that order before flattening.
    # PyTorch Linear weights are [out, in]; ours are [in, out], so transpose
    # back so the flattened layout matches the reference exactly.
    params_rev = [w3.T, b2.reshape(-1), w2.T, w1.T]
    return jnp.concatenate([p.reshape(-1) for p in params_rev])


def decentralized_algor_forward(x, params, world_size=2):
    w1, w2, b2, w3 = params
    B, _ = x.shape
    out_dim = w3.shape[1]

    # --- lane/sublane-aligned zero padding (safe through linear + ReLU;
    #     padded logit columns are masked inside the kernel). ---
    Bp = ((B + SUBLANE - 1) // SUBLANE) * SUBLANE
    Kp = LANE
    x_p = _pad2d(x, Bp, Kp)
    w1_p = _pad2d(w1, Kp, Kp)
    w2_p = _pad2d(w2, Kp, Kp)
    b2_p = _pad2d(b2, 1, Kp)
    w3_p = _pad2d(w3, Kp, Kp)

    # Flattened params -> lane-dense [rows, 128] slab (rows multiple of 8).
    flat = build_and_flatten_params_reversed(w1, w2, b2, w3)
    n = flat.shape[0]
    rows = -(-n // LANE)
    rows = -(-rows // SUBLANE) * SUBLANE
    flat_p = jnp.zeros((rows * LANE,), jnp.float32).at[:n].set(flat)
    flat_p = flat_p.reshape(rows, LANE)

    full = lambda shape: pl.BlockSpec(shape, lambda: tuple(0 for _ in shape))
    kernel = functools.partial(
        _fused_forward_kernel, out_dim=out_dim, world_size=world_size)

    out_p, peer_p = pl.pallas_call(
        kernel,
        out_shape=(jax.ShapeDtypeStruct((Bp, Kp), jnp.float32),
                   jax.ShapeDtypeStruct((rows, LANE), jnp.float32)),
        in_specs=[full(x_p.shape), full(w1_p.shape), full(w2_p.shape),
                  full(b2_p.shape), full(w3_p.shape), full(flat_p.shape)],
        out_specs=(full((Bp, Kp)), full((rows, LANE))),
    )(x_p, w1_p, w2_p, b2_p, w3_p, flat_p)

    out = out_p[:B, :out_dim]             # softmax(module(x))
    peer_weight = peer_p.reshape(-1)[:n]  # self.peer_weight after communicate
    return out, peer_weight


# --------------------------------- main --------------------------------------

if __name__ == "__main__":
    key = jax.random.PRNGKey(0)
    k_x, k1, k2, k2b, k3 = jax.random.split(key, 5)

    batch = 8
    in_dim, h1_dim, h2_dim, out_dim = 2, 10, 50, 4

    # Deterministic synthetic parameters (stored as [in, out]).
    x = jax.random.normal(k_x, (batch, in_dim), dtype=jnp.float32)
    w1 = jax.random.normal(k1, (in_dim, h1_dim), dtype=jnp.float32) * 0.5
    w2 = jax.random.normal(k2, (h1_dim, h2_dim), dtype=jnp.float32) * 0.2
    b2 = jax.random.normal(k2b, (1, h2_dim), dtype=jnp.float32) * 0.1
    w3 = jax.random.normal(k3, (h2_dim, out_dim), dtype=jnp.float32) * 0.2

    out, peer_weight = decentralized_algor_forward(
        x, (w1, w2, b2, w3), world_size=2)
    out = jax.block_until_ready(out)
    peer_weight = jax.block_until_ready(peer_weight)

    # Pure-JAX reference of the module forward.
    h1_ref = jnp.maximum(x @ w1, 0.0)
    h2_ref = jnp.maximum(h1_ref @ w2 + b2, 0.0)
    ref = jax.nn.softmax(h2_ref @ w3, axis=-1)

    # Sanity: softmax rows sum to 1, module output matches reference, and the
    # peer weight equals the flattened params (identical ranks -> mean == self).
    assert jnp.allclose(jnp.sum(out, axis=-1), 1.0, atol=1e-3), jnp.sum(out, -1)
    assert jnp.allclose(out, ref, atol=1e-3, rtol=1e-3)
    flat_ref = build_and_flatten_params_reversed(w1, w2, b2, w3)
    assert jnp.allclose(peer_weight, flat_ref, atol=1e-6)

    print("KERNEL_OK")
</pallas_src>

<mosaic_0001>
module attributes {stable_mosaic.version = 11 : i64} {
  func.func @_fused_forward_kernel(%arg0: memref<8x128xf32, #tpu.memory_space<vmem>>, %arg1: memref<128x128xf32, #tpu.memory_space<vmem>>, %arg2: memref<128x128xf32, #tpu.memory_space<vmem>>, %arg3: memref<1x128xf32, #tpu.memory_space<vmem>>, %arg4: memref<128x128xf32, #tpu.memory_space<vmem>>, %arg5: memref<8x128xf32, #tpu.memory_space<vmem>>, %arg6: memref<8x128xf32, #tpu.memory_space<vmem>>, %arg7: memref<8x128xf32, #tpu.memory_space<vmem>>) attributes {dimension_semantics = [], scalar_prefetch = 0 : i64, scratch_operands = 0 : i64, tpu.core_type = #tpu.core_type<tc>} {
    %c0 = arith.constant 0 : index
    %c0_0 = arith.constant 0 : index
    %0 = vector.load %arg0[%c0, %c0_0] : memref<8x128xf32, #tpu.memory_space<vmem>>, vector<8x128xf32>
    %c0_1 = arith.constant 0 : index
    %c0_2 = arith.constant 0 : index
    %1 = vector.load %arg1[%c0_1, %c0_2] : memref<128x128xf32, #tpu.memory_space<vmem>>, vector<128x128xf32>
    %cst = arith.constant dense<0.000000e+00> : vector<8x128xf32>
    %2 = tpu.matmul %0, %1, %cst {dimension_numbers = #tpu.dot_dimension_numbers<[1], [0], [0], [1], [0, 0, 1, 1], [], []>} : vector<8x128xf32>, vector<128x128xf32>, vector<8x128xf32> -> vector<8x128xf32>
    %cst_3 = arith.constant 0.000000e+00 : f32
    %3 = vector.broadcast %cst_3 : f32 to vector<8x128xf32>
    %4 = arith.maximumf %2, %3 : vector<8x128xf32>
    %c0_4 = arith.constant 0 : index
    %c0_5 = arith.constant 0 : index
    %5 = vector.load %arg2[%c0_4, %c0_5] : memref<128x128xf32, #tpu.memory_space<vmem>>, vector<128x128xf32>
    %cst_6 = arith.constant dense<0.000000e+00> : vector<8x128xf32>
    %6 = tpu.matmul %4, %5, %cst_6 {dimension_numbers = #tpu.dot_dimension_numbers<[1], [0], [0], [1], [0, 0, 1, 1], [], []>} : vector<8x128xf32>, vector<128x128xf32>, vector<8x128xf32> -> vector<8x128xf32>
    %c0_7 = arith.constant 0 : index
    %c0_8 = arith.constant 0 : index
    %7 = vector.load %arg3[%c0_7, %c0_8] : memref<1x128xf32, #tpu.memory_space<vmem>>, vector<1x128xf32>
    %8 = vector.broadcast %7 : vector<1x128xf32> to vector<8x128xf32>
    %9 = arith.addf %6, %8 : vector<8x128xf32>
    %cst_9 = arith.constant 0.000000e+00 : f32
    %10 = vector.broadcast %cst_9 : f32 to vector<8x128xf32>
    %11 = arith.maximumf %9, %10 : vector<8x128xf32>
    %c0_10 = arith.constant 0 : index
    %c0_11 = arith.constant 0 : index
    %12 = vector.load %arg4[%c0_10, %c0_11] : memref<128x128xf32, #tpu.memory_space<vmem>>, vector<128x128xf32>
    %cst_12 = arith.constant dense<0.000000e+00> : vector<8x128xf32>
    %13 = tpu.matmul %11, %12, %cst_12 {dimension_numbers = #tpu.dot_dimension_numbers<[1], [0], [0], [1], [0, 0, 1, 1], [], []>} : vector<8x128xf32>, vector<128x128xf32>, vector<8x128xf32> -> vector<8x128xf32>
    %14 = tpu.iota {dimensions = array<i32: 1>} : vector<8x128xi32>
    %c4_i32 = arith.constant 4 : i32
    %15 = vector.broadcast %c4_i32 : i32 to vector<8x128xi32>
    %16 = arith.cmpi slt, %14, %15 : vector<8x128xi32>
    %cst_13 = arith.constant -1.000000e+30 : f32
    %17 = vector.broadcast %cst_13 : f32 to vector<8x128xf32>
    %18 = arith.select %16, %13, %17 : vector<8x128xi1>, vector<8x128xf32>
    %cst_14 = arith.constant dense<0xFF800000> : vector<8xf32>
    %19 = vector.multi_reduction <maximumf>, %18, %cst_14 [1] : vector<8x128xf32> to vector<8xf32>
    %20 = vector.shape_cast %19 : vector<8xf32> to vector<8x1xf32>
    %21 = vector.broadcast %20 : vector<8x1xf32> to vector<8x128xf32>
    %22 = arith.subf %18, %21 : vector<8x128xf32>
    %23 = math.exp %22 : vector<8x128xf32>
    %cst_15 = arith.constant dense<0.000000e+00> : vector<8xf32>
    %24 = vector.multi_reduction <add>, %23, %cst_15 [1] : vector<8x128xf32> to vector<8xf32>
    %25 = vector.shape_cast %24 : vector<8xf32> to vector<8x1xf32>
    %26 = vector.broadcast %25 : vector<8x1xf32> to vector<8x128xf32>
    %27 = arith.divf %23, %26 : vector<8x128xf32>
    %c0_16 = arith.constant 0 : index
    %c0_17 = arith.constant 0 : index
    %28 = vector.load %arg6[%c0_16, %c0_17] : memref<8x128xf32, #tpu.memory_space<vmem>>, vector<8x128xf32>
    tpu.vector_store %arg6[%c0_16, %c0_17], %27 {strides = array<i32>} : memref<8x128xf32, #tpu.memory_space<vmem>>, vector<8x128xf32>,
    %c0_18 = arith.constant 0 : index
    %c0_19 = arith.constant 0 : index
    %29 = vector.load %arg5[%c0_18, %c0_19] : memref<8x128xf32, #tpu.memory_space<vmem>>, vector<8x128xf32>
    %cst_20 = arith.constant 2.000000e+00 : f32
    %30 = vector.broadcast %cst_20 : f32 to vector<8x128xf32>
    %31 = arith.mulf %29, %30 : vector<8x128xf32>
    %cst_21 = arith.constant 5.000000e-01 : f32
    %32 = vector.broadcast %cst_21 : f32 to vector<8x128xf32>
    %33 = arith.mulf %31, %32 : vector<8x128xf32>
    %c0_22 = arith.constant 0 : index
    %c0_23 = arith.constant 0 : index
    %34 = vector.load %arg7[%c0_22, %c0_23] : memref<8x128xf32, #tpu.memory_space<vmem>>, vector<8x128xf32>
    tpu.vector_store %arg7[%c0_22, %c0_23], %33 {strides = array<i32>} : memref<8x128xf32, #tpu.memory_space<vmem>>, vector<8x128xf32>,
    return
  }
}

</mosaic_0001>

<bundles_post_ra>
// kernel: tpu_custom_call.1
= control target key start
LH: loop header
LB: loop body
LE: loop exit
PB: predicated region body
PF: predicated region fallthrough
CT: control target
= control target key end

     0   :  { %13 = vsyncpa [#allocation3], 0  ;;  %s547_s0 = inlined_call_operand.hbm [shape: f32[8,128], index: 0, kind: input, shape index: {}]   ;;  %s548_s1 = inlined_call_operand.hbm [shape: f32[128,128], index: 1, kind: input, shape index: {}]   ;;  %s549_s2 = inlined_call_operand.hbm [shape: f32[128,128], index: 2, kind: input, shape index: {}]   ;;  %s550_s3 = inlined_call_operand.vmem [shape: f32[1,128], index: 3, kind: input, shape index: {}]   ;;  %s551_s4 = inlined_call_operand.hbm [shape: f32[128,128], index: 4, kind: input, shape index: {}]   ;;  %s552_s5 = inlined_call_operand.hbm [shape: f32[8,128], index: 5, kind: input, shape index: {}]   ;;  %s553_s6 = inlined_call_operand.hbm [shape: f32[8,128], index: 6, kind: output, shape index: {0}]   ;;  %s554_s7 = inlined_call_operand.hbm [shape: f32[8,128], index: 7, kind: output, shape index: {1}]  }
   0x1   :  { %14 = vsyncpa [#allocation6], 0 }
   0x2   :  { %15 = vsyncpa [#allocation9], 0 }
   0x3   :  { %16 = vsyncpa [#allocation4], 0  ;;  %s33_s26 = sshll.u32 %s548_s1, 4  ;;  %s34_s26 = int_to_ptr.hbm [resolvable:$true] %s33_s26 }
   0x4   :  { %17 = vsyncpa [#allocation13], 0  ;;  %s474_s27 = smov [#allocation5]   ;;  %s61_s8 = sshll.u32 %s551_s4, 4  ;;  %s62_s8 = int_to_ptr.hbm [resolvable:$true] %s61_s8 }
   0x5   :  { %s35_s28 = sshll.u32 %s474_s27, 4  ;;  %s475_s9 = smov 128   ;;  %s36_s28 = int_to_ptr.vmem [resolvable:$true] %s35_s28 }
   0x6   :  { %s476_s10 = smov 8   ;;  %s477_s11 = smov [#allocation8]  }
   0x7   :  { %41 = dma.hbm_to_vmem [thread:$0]  %s34_s26, 2048, %s36_s28, [#allocation6], %s475_s9, %s475_s9, %s476_s10  }
   0x8   :  { %s63_s12 = sshll.u32 %s477_s11, 4  ;;  %s23_s15 = sshll.u32 %s547_s0, 4  ;;  %s64_s12 = int_to_ptr.vmem [resolvable:$true] %s63_s12  ;;  %s24_s15 = int_to_ptr.hbm [resolvable:$true] %s23_s15 }
   0x9   :  { %69 = dma.hbm_to_vmem [thread:$0]  %s62_s8, 2048, %s64_s12, [#allocation9], %s475_s9, %s475_s9, %s476_s10  }
   0xa   :  { %s46_s17 = sshll.u32 %s549_s2, 4  ;;  %s478_s18 = smov [#allocation2]   ;;  %s47_s17 = int_to_ptr.hbm [resolvable:$true] %s46_s17 }
   0xb   :  { %s25_s19 = sshll.u32 %s478_s18, 4  ;;  %s479_s4 = smov [#allocation7]   ;;  %s26_s19 = int_to_ptr.vmem [resolvable:$true] %s25_s19 }
   0xc   :  { %28 = dma.hbm_to_vmem [thread:$0]  %s24_s15, 128, %s26_s19, [#allocation3]  }
   0xd   :  { %s48_s20 = sshll.u32 %s479_s4, 4  ;;  %s75_s23 = sshll.u32 %s552_s5, 4  ;;  %s49_s20 = int_to_ptr.vmem [resolvable:$true] %s48_s20  ;;  %s76_s23 = int_to_ptr.hbm [resolvable:$true] %s75_s23 }
   0xe   :  { %54 = dma.hbm_to_vmem [thread:$0]  %s47_s17, 2048, %s49_s20, [#allocation6], %s475_s9, %s475_s9, %s476_s10  }
   0xf   :  { %s480_s0 = smov [#allocation10]  }
  0x10   :  { %s77_s24 = sshll.u32 %s480_s0, 4  ;;  %s78_s24 = int_to_ptr.vmem [resolvable:$true] %s77_s24 }
  0x11   :  { %80 = dma.hbm_to_vmem [thread:$0]  %s76_s23, 128, %s78_s24, [#allocation9]  }
  0x12   :  { %464 = dma.done.wait [#allocation3], 128  }
  0x13   :  { %465 = vsyncadd [#allocation3], 4294967168 }
  0x14   :  { %466 = dma.done.wait [#allocation6], 4096  }
  0x15   :  { %467 = vsyncadd [#allocation6], 4294963200 }
  0x16   :  { %468 = dma.done.wait [#allocation9], 2176  }
  0x17   :  { %469 = vsyncadd [#allocation9], 4294965120  ;;  %v117_v0 = vld [vmem:[#allocation5 + $0x78] sm:$0xff]  ;;  %v116_v1 = vld [vmem:[#allocation5 + $0x70] sm:$0xff]  ;;  %v216_v55 = vlaneseq  ;;  %s481_s25 = smov [#allocation12]   ;;  %s265_s28 = sshll.u32 %s554_s7, 4  ;;  %s266_s28 = int_to_ptr.hbm [resolvable:$true] %s265_s28 }
  0x18   :  { %118 = vmatpush.msra.mxu0 %v117_v0  ;;  %v115_v2 = vld [vmem:[#allocation5 + $0x68] sm:$0xff]  ;;  %v114_v3 = vld [vmem:[#allocation5 + $0x60] sm:$0xff]  ;;  %v154_v4 = vld [vmem:[#allocation7 + $0x78] sm:$0xff]  ;;  %s263_s26 = sshll.u32 %s481_s25, 4  ;;  %s482_s7 = smov [#allocation11]   ;;  %s264_s26 = int_to_ptr.vmem [resolvable:$true] %s263_s26 }
  0x19   :  { %v113_v5 = vld [vmem:[#allocation5 + $0x58] sm:$0xff]  ;;  %159 = vmatpush.msra.mxu1 %v154_v4  ;;  %v153_v6 = vld [vmem:[#allocation7 + $0x70] sm:$0xff]  ;;  %v152_v7 = vld [vmem:[#allocation7 + $0x68] sm:$0xff]  ;;  %v217_v56 = vand.u32 127, %v216_v55  ;;  %s252_s29 = sshll.u32 %s482_s7, 4  ;;  %s254_s9 = sshll.u32 %s553_s6, 4  ;;  %s253_s29 = int_to_ptr.vmem [resolvable:$true] %s252_s29  ;;  %s255_s9 = int_to_ptr.hbm [resolvable:$true] %s254_s9 }
  0x1a   :  { %119 = vmatpush.msra.mxu0 %v116_v1  ;;  %v112_v8 = vld [vmem:[#allocation5 + $0x50] sm:$0xff]  ;;  %v151_v9 = vld [vmem:[#allocation7 + $0x60] sm:$0xff]  ;;  %v111_v10 = vld [vmem:[#allocation5 + $0x48] sm:$0xff] }
  0x1b   :  { %160 = vmatpush.msra.mxu1 %v153_v6  ;;  %v150_v11 = vld [vmem:[#allocation7 + $0x58] sm:$0xff]  ;;  %v110_v12 = vld [vmem:[#allocation5 + $0x40] sm:$0xff]  ;;  %v149_v13 = vld [vmem:[#allocation7 + $0x50] sm:$0xff]  ;;  %vm218_vm0 = vcmp.lt.s32.totalorder %v217_v56, 4 }
  0x1c   :  { %120 = vmatpush.msra.mxu0 %v115_v2  ;;  %v109_v14 = vld [vmem:[#allocation5 + $0x38] sm:$0xff]  ;;  %v148_v15 = vld [vmem:[#allocation7 + $0x48] sm:$0xff]  ;;  %v108_v16 = vld [vmem:[#allocation5 + $0x30] sm:$0xff] }
  0x1d   :  { %161 = vmatpush.msra.mxu1 %v152_v7  ;;  %v147_v17 = vld [vmem:[#allocation7 + $0x40] sm:$0xff]  ;;  %v107_v18 = vld [vmem:[#allocation5 + $0x28] sm:$0xff]  ;;  %v146_v19 = vld [vmem:[#allocation7 + $0x38] sm:$0xff] }
  0x1e   :  { %121 = vmatpush.msra.mxu0 %v114_v3  ;;  %v106_v20 = vld [vmem:[#allocation5 + $0x20] sm:$0xff]  ;;  %v145_v21 = vld [vmem:[#allocation7 + $0x30] sm:$0xff]  ;;  %v105_v22 = vld [vmem:[#allocation5 + $0x18] sm:$0xff] }
  0x1f   :  { %162 = vmatpush.msra.mxu1 %v151_v9  ;;  %v144_v23 = vld [vmem:[#allocation7 + $0x28] sm:$0xff]  ;;  %v104_v24 = vld [vmem:[#allocation5 + $0x10] sm:$0xff]  ;;  %v143_v25 = vld [vmem:[#allocation7 + $0x20] sm:$0xff] }
  0x20   :  { %122 = vmatpush.msra.mxu0 %v113_v5  ;;  %v103_v26 = vld [vmem:[#allocation5 + $0x8] sm:$0xff]  ;;  %v142_v27 = vld [vmem:[#allocation7 + $0x18] sm:$0xff]  ;;  %v102_v28 = vld [vmem:[#allocation5] sm:$0xff] }
  0x21   :  { %163 = vmatpush.msra.mxu1 %v150_v11  ;;  %v101_v29 = vld [vmem:[#allocation2] sm:$0xff]  ;;  %v141_v30 = vld [vmem:[#allocation7 + $0x10] sm:$0xff]  ;;  %v140_v31 = vld [vmem:[#allocation7 + $0x8] sm:$0xff] }
  0x22   :  { %123 = vmatpush.msra.mxu0 %v112_v8  ;;  %v139_v32 = vld [vmem:[#allocation7] sm:$0xff]  ;;  %v195_v33 = vld [vmem:[#allocation8 + $0x78] sm:$0xff]  ;;  %v194_v34 = vld [vmem:[#allocation8 + $0x70] sm:$0xff] }
  0x23   :  { %164 = vmatpush.msra.mxu1 %v149_v13  ;;  %196 = vmatpush.msra.mxu2 %v195_v33  ;;  %v193_v35 = vld [vmem:[#allocation8 + $0x68] sm:$0xff]  ;;  %v192_v36 = vld [vmem:[#allocation8 + $0x60] sm:$0xff]  ;;  %v191_v37 = vld [vmem:[#allocation8 + $0x58] sm:$0xff] }
  0x24   :  { %124 = vmatpush.msra.mxu0 %v111_v10  ;;  %v190_v38 = vld [vmem:[#allocation8 + $0x50] sm:$0xff]  ;;  %v189_v39 = vld [vmem:[#allocation8 + $0x48] sm:$0xff]  ;;  %v188_v40 = vld [vmem:[#allocation8 + $0x40] sm:$0xff] }
  0x25   :  { %165 = vmatpush.msra.mxu1 %v148_v15  ;;  %197 = vmatpush.msra.mxu2 %v194_v34  ;;  %v187_v41 = vld [vmem:[#allocation8 + $0x38] sm:$0xff]  ;;  %v186_v42 = vld [vmem:[#allocation8 + $0x30] sm:$0xff]  ;;  %v185_v43 = vld [vmem:[#allocation8 + $0x28] sm:$0xff] }
  0x26   :  { %125 = vmatpush.msra.mxu0 %v110_v12  ;;  %v184_v44 = vld [vmem:[#allocation8 + $0x20] sm:$0xff]  ;;  %v183_v45 = vld [vmem:[#allocation8 + $0x18] sm:$0xff]  ;;  %v182_v48 = vld [vmem:[#allocation8 + $0x10] sm:$0xff] }
  0x27   :  { %166 = vmatpush.msra.mxu1 %v147_v17  ;;  %198 = vmatpush.msra.mxu2 %v193_v35  ;;  %v181_v49 = vld [vmem:[#allocation8 + $0x8] sm:$0xff]  ;;  %v180_v50 = vld [vmem:[#allocation8] sm:$0xff]  ;;  %v291_v51 = vld [vmem:[%s550_s3] ss:$0 sm:$0xff] }
  0x28   :  { %126 = vmatpush.msra.mxu0 %v109_v14  ;;  %v243_v63 = vld [vmem:[#allocation10] sm:$0xff] }
  0x29   :  { %167 = vmatpush.msra.mxu1 %v146_v19  ;;  %199 = vmatpush.msra.mxu2 %v192_v36  ;;  %v244_v0 = vmul.f32 2.0, %v243_v63 }
  0x2a   :  { %127 = vmatpush.msra.mxu0 %v108_v16 }
  0x2b   :  { %168 = vmatpush.msra.mxu1 %v145_v21  ;;  %200 = vmatpush.msra.mxu2 %v191_v37  ;;  %v245_v1 = vmul.f32 0.5, %v244_v0 }
  0x2c   :  { %128 = vmatpush.msra.mxu0 %v107_v18 }
  0x2d   :  { %169 = vmatpush.msra.mxu1 %v144_v23  ;;  %201 = vmatpush.msra.mxu2 %v190_v38  ;;  %246 = vst [vmem:[#allocation12] sm:$0xff] %v245_v1 }
  0x2e   :  { %129 = vmatpush.msra.mxu0 %v106_v20  ;;  %268 = dma.vmem_to_hbm [thread:$0]  %s264_s26, 128, %s266_s28, [#allocation13]  }
  0x2f   :  { %170 = vmatpush.msra.mxu1 %v143_v25  ;;  %202 = vmatpush.msra.mxu2 %v189_v39 }
  0x30   :  { %130 = vmatpush.msra.mxu0 %v105_v22 }
  0x31   :  { %171 = vmatpush.msra.mxu1 %v142_v27  ;;  %203 = vmatpush.msra.mxu2 %v188_v40 }
  0x32   :  { %131 = vmatpush.msra.mxu0 %v104_v24 }
  0x33   :  { %172 = vmatpush.msra.mxu1 %v141_v30  ;;  %204 = vmatpush.msra.mxu2 %v187_v41 }
  0x34   :  { %132 = vmatpush.msra.mxu0 %v103_v26 }
  0x35   :  { %173 = vmatpush.msra.mxu1 %v140_v31  ;;  %205 = vmatpush.msra.mxu2 %v186_v42 }
  0x36   :  { %133 = vmatpush.msra.mxu0 %v102_v28 }
  0x37   :  { %134 = vmatmul.f32.vlgmr.msra.gmra.mxu0 %v101_v29  ;;  %174 = vmatpush.msra.mxu1 %v139_v32 }
  0x38   :  { %206 = vmatpush.msra.mxu2 %v185_v43 }
  0x3a   :  { %207 = vmatpush.msra.mxu2 %v184_v44 }
  0x3c   :  { %208 = vmatpush.msra.mxu2 %v183_v45 }
  0x3e   :  { %209 = vmatpush.msra.mxu2 %v182_v48 }
  0x40   :  { %210 = vmatpush.msra.mxu2 %v181_v49 }
  0x42   :  { %211 = vmatpush.msra.mxu2 %v180_v50 }
  0xb4   :  { %v135_v46 = vpop.f32.mrf.mxu0 }
  0xb5   :  { %v138_v47 = vmax.f32 %v135_v46, 0.0 }
  0xb7   :  { %175 = vmatmul.f32.vlgmr.msra.gmra.mxu1 %v138_v47 }
 0x134   :  { %v176_v52 = vpop.f32.mrf.mxu1 }
 0x135   :  { %v177_v53 = vadd.f32 %v291_v51, %v176_v52 }
 0x137   :  { %v179_v54 = vmax.f32 %v177_v53, 0.0 }
 0x139   :  { %212 = vmatmul.f32.vlgmr.msra.gmra.mxu2 %v179_v54 }
 0x1bc   :  { %v213_v57 = vpop.f32.mrf.mxu2 }
 0x1bd   :  { %v219_v58 = vsel %vm218_vm0, %v213_v57, -1e+30 }
 0x1be   :  { %220 = vmax.xlane.f32.xlu0 %v219_v58 }
 0x231   :  { %v221_v59 = vpop.xlane.xlu0 %220 }
 0x232   :  { %v222_v60 = vsub.f32 %v219_v58, %v221_v59 }
 0x234   :  { %v223_v61 = vmul.f32 1.442695, %v222_v60 }
 0x236   :  { %292 = vpow2.f32 %v223_v61 }
 0x23c   :  { %v293_v62 = vpop.eup %292 }
 0x23d   :  { %225 = vadd.xlane.f32.xlu0 %v293_v62 }
 0x2b0   :  { %v226_v2 = vpop.xlane.xlu0 %225 }
 0x2b1   :  { %294 = vrcp.f32 %v226_v2  ;;  %v238_v6 = vand.u32 2147483648, %v226_v2  ;;  %v236_v8 = vand.u32 2147483647, %v226_v2  ;;  %vm232_vm2 = vweird.f32 %v226_v2 }
 0x2b3   :  { %v239_v10 = vor.u32 1.1754944e-38, %v238_v6  ;;  %vm237_vm4 = vcmp.eq.f32.partialorder %v236_v8, 8.507059e+37 }
 0x2b7   :  { %v295_v3 = vpop.eup %294 }
 0x2b8   :  { %v228_v4 = vmul.f32 %v295_v3, %v226_v2  ;;  %vm233_vm1 = vweird.f32 %v295_v3 }
 0x2b9   :  { %vm234_vm3 = vmor %vm232_vm2, %vm233_vm1 }
 0x2ba   :  { %v229_v5 = vsub.f32 1.0, %v228_v4 }
 0x2bc   :  { %v230_v7 = vmul.f32 %v295_v3, %v229_v5 }
 0x2be   :  { %v231_v9 = vadd.f32 %v295_v3, %v230_v7 }
 0x2c0   :  { %v235_v11 = vsel %vm234_vm3, %v295_v3, %v231_v9 }
 0x2c1   :  { %v240_v12 = vsel %vm237_vm4, %v239_v10, %v235_v11 }
 0x2c2   :  { %v241_v13 = vmul.f32 %v293_v62, %v240_v12 }
 0x2c4   :  { %242 = vst [vmem:[#allocation11] sm:$0xff] %v241_v13 }
 0x2c5   :  { %257 = dma.vmem_to_hbm [thread:$0]  %s253_s29, 128, %s255_s9, [#allocation4]  }
 0x2c6   :  { %470 = dma.done.wait [#allocation4], 128  }
 0x2c7   :  { %471 = vsyncadd [#allocation4], 4294967168 }
 0x2c8   :  { %472 = dma.done.wait [#allocation13], 128  }
 0x2c9   :  { %473 = vsyncadd [#allocation13], 4294967168 }
 0x2ca   :  { %277 = vsyncpa [#allocation3], 1 }
 0x2cb   :  { %278 = vsyncpa [#allocation6], 1 }
 0x2cc   :  { %279 = vsyncpa [#allocation9], 1 }
 0x2cd   :  { %280 = vsyncpa [#allocation4], 1 }
 0x2ce   :  { %281 = vsyncpa [#allocation13], 1 }

</bundles_post_ra>
